<compile_context>
chip_gen: v7x
topology: tpu7x:2x2x1
jax: 0.10.0
libtpu: 0.0.40
codegen_flags: <defaults>
</compile_context>

<pallas_src>
import jax
import jax.numpy as jnp
from jax.experimental import pallas as pl
from jax.experimental.pallas import tpu as pltpu


# --------------------------- in-kernel math helpers ---------------------------

def _erf_f32(x):
    """erf via Abramowitz & Stegun 7.1.26 (max abs err 1.5e-7, float32-exact).

    Built only from exp / mul / add / select so it is guaranteed to lower in
    Mosaic.
    """
    # TODO(synk): switch to jax.lax.erf once an erf lowering is guaranteed in
    # the Mosaic TPU backend; this polynomial matches it to ~1.5e-7.
    p = 0.3275911
    a1, a2, a3, a4, a5 = (0.254829592, -0.284496736, 1.421413741,
                          -1.453152027, 1.061405429)
    sign = jnp.where(x >= 0.0, 1.0, -1.0)
    z = jnp.abs(x)
    t = 1.0 / (1.0 + p * z)
    poly = ((((a5 * t + a4) * t + a3) * t + a2) * t + a1) * t
    return sign * (1.0 - poly * jnp.exp(-z * z))


def _gelu_exact(x):
    """Exact (erf-based) GELU, matching torch.nn.GELU() default."""
    inv_sqrt2 = 0.7071067811865476
    return 0.5 * x * (1.0 + _erf_f32(x * inv_sqrt2))


# --------------------------------- kernel -------------------------------------

def _ffn_kernel(x_ref, w1_ref, w2_ref, o_ref):
    """One batch per grid step: y = GELU(x @ W1) @ W2, fully VMEM-resident."""
    x = x_ref[0]                                                   # (T, D) f32
    h = jnp.dot(x, w1_ref[...], preferred_element_type=jnp.float32)  # (T, Dh)
    h = _gelu_exact(h)
    y = jnp.dot(h, w2_ref[...], preferred_element_type=jnp.float32)  # (T, D)
    o_ref[0] = y.astype(o_ref.dtype)


# -------------------------------- wrapper --------------------------------------

def prepare_params(w_fc1, w_fc2):
    """One-time setup: transpose torch-layout Linear weights to (in, out).

    torch stores fc1.weight as (dim_hidden, dim) and fc2.weight as (dim,
    dim_hidden) and computes x @ W.T; pre-transposing here avoids a per-call
    XLA transpose op in the forward path.
    """
    return jnp.asarray(w_fc1.T), jnp.asarray(w_fc2.T)   # (D, Dh), (Dh, D)


def ffn_forward(x, w1, w2):
    """x: (B, T, D); w1: (D, Dh); w2: (Dh, D) -> (B, T, D)."""
    B, T, D = x.shape
    Dh = w1.shape[1]
    return pl.pallas_call(
        _ffn_kernel,
        out_shape=jax.ShapeDtypeStruct((B, T, D), x.dtype),
        grid=(B,),
        in_specs=[
            pl.BlockSpec((1, T, D), lambda b: (b, 0, 0)),   # x slab per batch
            pl.BlockSpec((D, Dh), lambda b: (0, 0)),        # W1 (whole, reused)
            pl.BlockSpec((Dh, D), lambda b: (0, 0)),        # W2 (whole, reused)
        ],
        out_specs=pl.BlockSpec((1, T, D), lambda b: (b, 0, 0)),
        compiler_params=pltpu.CompilerParams(
            dimension_semantics=("parallel",)),              # 2 TCs on v7x
    )(x, w1, w2)


# ---------------------- pure-JAX reference (for checking) ----------------------

def ffn_reference(x, w_fc1, w_fc2):
    h = x @ w_fc1.T
    h = jax.nn.gelu(h, approximate=False)   # torch.nn.GELU() default = exact erf
    return h @ w_fc2.T


# ---------------------------------- main ----------------------------------------

if __name__ == "__main__":
    key = jax.random.PRNGKey(0)
    B, T, D = 2, 8, 32
    dim_mult = 4.0
    Dh = int(dim_mult * D)

    k1, k2, k3 = jax.random.split(key, 3)
    x = jax.random.normal(k1, (B, T, D), dtype=jnp.float32)
    # torch-layout Linear weights (out_features, in_features), no bias.
    w_fc1 = 0.05 * jax.random.normal(k2, (Dh, D), dtype=jnp.float32)
    w_fc2 = 0.05 * jax.random.normal(k3, (D, Dh), dtype=jnp.float32)

    # One-time transpose at setup (not per forward call).
    w1, w2 = prepare_params(w_fc1, w_fc2)

    out = jax.block_until_ready(ffn_forward(x, w1, w2))
    ref = ffn_reference(x, w_fc1, w_fc2)

    assert out.shape == (B, T, D)
    err = float(jnp.max(jnp.abs(out - ref)))
    assert jnp.allclose(out, ref, rtol=2e-2, atol=2e-2), f"max abs err {err}"
    print("KERNEL_OK")
</pallas_src>

<mosaic_0001>
module attributes {stable_mosaic.version = 11 : i64} {
  func.func @_ffn_kernel(%arg0: i32, %arg1: memref<1x8x32xf32, #tpu.memory_space<vmem>>, %arg2: memref<32x128xf32, #tpu.memory_space<vmem>>, %arg3: memref<128x32xf32, #tpu.memory_space<vmem>>, %arg4: memref<1x8x32xf32, #tpu.memory_space<vmem>>) attributes {dimension_semantics = [#tpu.dimension_semantics<parallel>], iteration_bounds = array<i64: 2>, scalar_prefetch = 0 : i64, scratch_operands = 0 : i64, tpu.core_type = #tpu.core_type<tc>, window_params = [{transform_indices = @transform_0, window_bounds = array<i64: 1, 8, 32>}, {pipeline_mode = #tpu.pipeline_mode<synchronous>, transform_indices = @transform_1, window_bounds = array<i64: 32, 128>}, {pipeline_mode = #tpu.pipeline_mode<synchronous>, transform_indices = @transform_2, window_bounds = array<i64: 128, 32>}, {transform_indices = @transform_3, window_bounds = array<i64: 1, 8, 32>}]} {
    %c0 = arith.constant 0 : index
    %c0_0 = arith.constant 0 : index
    %c0_1 = arith.constant 0 : index
    %0 = vector.load %arg1[%c0, %c0_0, %c0_1] : memref<1x8x32xf32, #tpu.memory_space<vmem>>, vector<1x8x32xf32>
    %1 = vector.shape_cast %0 : vector<1x8x32xf32> to vector<8x32xf32>
    %c0_2 = arith.constant 0 : index
    %c0_3 = arith.constant 0 : index
    %2 = vector.load %arg2[%c0_2, %c0_3] : memref<32x128xf32, #tpu.memory_space<vmem>>, vector<32x128xf32>
    %cst = arith.constant dense<0.000000e+00> : vector<8x128xf32>
    %3 = tpu.matmul %1, %2, %cst {dimension_numbers = #tpu.dot_dimension_numbers<[1], [0], [0], [1], [0, 0, 1, 1], [], []>} : vector<8x32xf32>, vector<32x128xf32>, vector<8x128xf32> -> vector<8x128xf32>
    %cst_4 = arith.constant 5.000000e-01 : f32
    %4 = vector.broadcast %cst_4 : f32 to vector<8x128xf32>
    %5 = arith.mulf %4, %3 : vector<8x128xf32>
    %cst_5 = arith.constant 0.707106769 : f32
    %6 = vector.broadcast %cst_5 : f32 to vector<8x128xf32>
    %7 = arith.mulf %3, %6 : vector<8x128xf32>
    %cst_6 = arith.constant 0.000000e+00 : f32
    %8 = vector.broadcast %cst_6 : f32 to vector<8x128xf32>
    %9 = arith.cmpf oge, %7, %8 : vector<8x128xf32>
    %cst_7 = arith.constant 1.000000e+00 : f32
    %cst_8 = arith.constant -1.000000e+00 : f32
    %10 = vector.broadcast %cst_7 : f32 to vector<8x128xf32>
    %11 = vector.broadcast %cst_8 : f32 to vector<8x128xf32>
    %12 = arith.select %9, %10, %11 : vector<8x128xi1>, vector<8x128xf32>
    %13 = math.absf %7 : vector<8x128xf32>
    %cst_9 = arith.constant 0.327591091 : f32
    %14 = vector.broadcast %cst_9 : f32 to vector<8x128xf32>
    %15 = arith.mulf %14, %13 : vector<8x128xf32>
    %cst_10 = arith.constant 1.000000e+00 : f32
    %16 = vector.broadcast %cst_10 : f32 to vector<8x128xf32>
    %17 = arith.addf %16, %15 : vector<8x128xf32>
    %cst_11 = arith.constant 1.000000e+00 : f32
    %18 = vector.broadcast %cst_11 : f32 to vector<8x128xf32>
    %19 = arith.divf %18, %17 : vector<8x128xf32>
    %cst_12 = arith.constant 1.06140542 : f32
    %20 = vector.broadcast %cst_12 : f32 to vector<8x128xf32>
    %21 = arith.mulf %20, %19 : vector<8x128xf32>
    %cst_13 = arith.constant -1.45315206 : f32
    %22 = vector.broadcast %cst_13 : f32 to vector<8x128xf32>
    %23 = arith.addf %21, %22 : vector<8x128xf32>
    %24 = arith.mulf %23, %19 : vector<8x128xf32>
    %cst_14 = arith.constant 1.42141378 : f32
    %25 = vector.broadcast %cst_14 : f32 to vector<8x128xf32>
    %26 = arith.addf %24, %25 : vector<8x128xf32>
    %27 = arith.mulf %26, %19 : vector<8x128xf32>
    %cst_15 = arith.constant -0.284496725 : f32
    %28 = vector.broadcast %cst_15 : f32 to vector<8x128xf32>
    %29 = arith.addf %27, %28 : vector<8x128xf32>
    %30 = arith.mulf %29, %19 : vector<8x128xf32>
    %cst_16 = arith.constant 0.254829586 : f32
    %31 = vector.broadcast %cst_16 : f32 to vector<8x128xf32>
    %32 = arith.addf %30, %31 : vector<8x128xf32>
    %33 = arith.mulf %32, %19 : vector<8x128xf32>
    %cst_17 = arith.constant 0.000000e+00 : f32
    %34 = vector.broadcast %cst_17 : f32 to vector<8x128xf32>
    %35 = arith.subf %34, %13 : vector<8x128xf32>
    %36 = arith.mulf %35, %13 : vector<8x128xf32>
    %37 = math.exp %36 : vector<8x128xf32>
    %38 = arith.mulf %33, %37 : vector<8x128xf32>
    %cst_18 = arith.constant 1.000000e+00 : f32
    %39 = vector.broadcast %cst_18 : f32 to vector<8x128xf32>
    %40 = arith.subf %39, %38 : vector<8x128xf32>
    %41 = arith.mulf %12, %40 : vector<8x128xf32>
    %cst_19 = arith.constant 1.000000e+00 : f32
    %42 = vector.broadcast %cst_19 : f32 to vector<8x128xf32>
    %43 = arith.addf %42, %41 : vector<8x128xf32>
    %44 = arith.mulf %5, %43 : vector<8x128xf32>
    %c0_20 = arith.constant 0 : index
    %c0_21 = arith.constant 0 : index
    %45 = vector.load %arg3[%c0_20, %c0_21] : memref<128x32xf32, #tpu.memory_space<vmem>>, vector<128x32xf32>
    %cst_22 = arith.constant dense<0.000000e+00> : vector<8x32xf32>
    %46 = tpu.matmul %44, %45, %cst_22 {dimension_numbers = #tpu.dot_dimension_numbers<[1], [0], [0], [1], [0, 0, 1, 1], [], []>} : vector<8x128xf32>, vector<128x32xf32>, vector<8x32xf32> -> vector<8x32xf32>
    %c0_23 = arith.constant 0 : index
    %c0_24 = arith.constant 0 : index
    %c0_25 = arith.constant 0 : index
    %47 = vector.load %arg4[%c0_23, %c0_24, %c0_25] : memref<1x8x32xf32, #tpu.memory_space<vmem>>, vector<1x8x32xf32>
    %48 = vector.shape_cast %47 : vector<1x8x32xf32> to vector<8x32xf32>
    %49 = vector.shape_cast %46 : vector<8x32xf32> to vector<1x8x32xf32>
    tpu.vector_store %arg4[%c0_23, %c0_24, %c0_25], %49 {strides = array<i32>} : memref<1x8x32xf32, #tpu.memory_space<vmem>>, vector<1x8x32xf32>,
    return
  }
  func.func @transform_0(%arg0: i32) -> (i32, i32, i32) {
    %c0_i32 = arith.constant 0 : i32
    %c0_i32_0 = arith.constant 0 : i32
    %c0_i32_1 = arith.constant 0 : i32
    return %arg0, %c0_i32, %c0_i32_0 : i32, i32, i32
  }
  func.func @transform_1(%arg0: i32) -> (i32, i32) {
    %c0_i32 = arith.constant 0 : i32
    %c0_i32_0 = arith.constant 0 : i32
    %c0_i32_1 = arith.constant 0 : i32
    return %c0_i32, %c0_i32_0 : i32, i32
  }
  func.func @transform_2(%arg0: i32) -> (i32, i32) {
    %c0_i32 = arith.constant 0 : i32
    %c0_i32_0 = arith.constant 0 : i32
    %c0_i32_1 = arith.constant 0 : i32
    return %c0_i32, %c0_i32_0 : i32, i32
  }
  func.func @transform_3(%arg0: i32) -> (i32, i32, i32) {
    %c0_i32 = arith.constant 0 : i32
    %c0_i32_0 = arith.constant 0 : i32
    %c0_i32_1 = arith.constant 0 : i32
    return %arg0, %c0_i32, %c0_i32_0 : i32, i32, i32
  }
}

</mosaic_0001>

<bundles_post_ra>
// kernel: tpu_custom_call.1
= control target key start
LH: loop header
LB: loop body
LE: loop exit
PB: predicated region body
PF: predicated region fallthrough
CT: control target
= control target key end

     0   :  { %8 = vsyncpa [#allocation3], 0  ;;  %s839_s0 = inlined_call_operand.vmem [shape: f32[2,8,32], index: 0, kind: input, shape index: {}]   ;;  %s840_s1 = inlined_call_operand.vmem [shape: f32[32,128], index: 1, kind: input, shape index: {}]   ;;  %s841_s2 = inlined_call_operand.vmem [shape: f32[128,32], index: 2, kind: input, shape index: {}]   ;;  %s842_s3 = inlined_call_operand.hbm [shape: f32[2,8,32], index: 3, kind: output, shape index: {}]  }
   0x1   :  { %10 = vsyncpa [#allocation3 + $0x1], 0  ;;  %s677_s12 = smov 0   ;;  %s679_s13 = smov 0  }
   0x2   :  { %s681_s14 = smov 0   ;;  %s683_s15 = smov 0  }
   0x3 LB: > { %s698_s16 = sadd.s32 4294967295, %s650_s15   ;;  %s432_s17 = sadd.s32 4294967294, %s650_s15   ;;  %s650_s15 = sphi %s683_s15, %s848_s15   ;;  %s646_s14 = sphi %s681_s14, %s847_s14   ;;  %s642_s13 = sphi %s679_s13, %s846_s13   ;;  %s638_s12 = sphi %s677_s12, %s845_s12  }
   0x4   : > { %s702_s18 = sadd.s32 1, %s650_s15   ;;  %s91_s19 = sadd.s32 1, %s646_s14 }
   0x5   : > { %s88_s20 = ssub.s32 %s650_s15, %s702_s18  ;;  %p101_p0 = scmp.ne.s32.totalorder %s646_s14, %s642_s13 }
   0x6   : > { %p89_p1 = scmp.eq.s32.totalorder %s88_s20, 0  ;;  %p102_p2 = scmp.eq.s32.totalorder %s698_s16, 1 }
   0x7   : > { %p107_p3 = scmp.ne.s32.totalorder %s642_s13, %s638_s12  ;;  %p108_p4 = scmp.eq.s32.totalorder %s432_s17, 1 }
   0x8   : > { %s713_s21 = scalar_select %p89_p1, %s646_s14, %s91_s19  }
   0x9   : > { %p715_p5 = por %p102_p2, %p101_p0  ;;  %p719_p6 = por %p108_p4, %p107_p3 }
   0xa   : > { %p435_p7 = scmp.ge.s32.totalorder %s650_s15, 1  ;;  %p139_p8 = scmp.lt.s32.totalorder %s650_s15, 3 }
   0xc   : > { %p140_p9 = pnand %p435_p7, %p139_p8 }
   0xd   : > { %v167_v0 = vld [vmem:[%s840_s1] sm:$0xff] (!%p140_p9)  ;;  %v168_v1 = vld [vmem:[%s840_s1 + $0x8] sm:$0xff] (!%p140_p9)  ;;  %v169_v2 = vld [vmem:[%s840_s1 + $0x10] sm:$0xff] (!%p140_p9)  ;;  %v652_v3 = vmov (!%p140_p9), 0.0|0.0   ;;  %vm653_vm0 = vmmov (!%p140_p9), 0   ;;  %v654_v6 = vmov (!%p140_p9), 0.0  }
   0xe   : > { %143 = sbr.rel (%p140_p9) target bundleno = 511 (0x1ff), region = 32  ;;  %511 = vmatprep.subr.bf16.mxu0 (!%p140_p9), %v652_v3  ;;  %v512_v4 = vpack.c.bf16 (!%p140_p9), %v168_v1, %v167_v0  ;;  %v170_v5 = vld [vmem:[%s840_s1 + $0x18] sm:$0xff] (!%p140_p9)  ;;  %473 = vmatprep.mubr.msk.f32.mxu0 (!%p140_p9), %vm653_vm0, %v654_v6  ;;  %p162_p10 = scmp.lt.s32.totalorder (!%p140_p9), %s698_s16, 1  ;;  %vm171_vm1 = vcmask (!%p140_p9), 261120   ;;  %v272_v9 = vld [vmem:[%s841_s2] sm:$0xff] (!%p140_p9)  ;;  %v273_v10 = vld [vmem:[%s841_s2 + $0x8] sm:$0xff] (!%p140_p9) }
   0xf   : > { %517 = vmatprep.subr.bf16.mxu1 (!%p140_p9), %v652_v3  ;;  %508 = vmatprep.mubr.msk.f32.mxu1 (!%p140_p9), %vm653_vm0, %v654_v6  ;;  %v515_v7 = vpack.c.bf16 (!%p140_p9), %v170_v5, %v169_v2  ;;  %v518_v11 = vpack.c.bf16 (!%p140_p9), %v273_v10, %v272_v9  ;;  %v274_v12 = vld [vmem:[%s841_s2 + $0x10] sm:$0xff] (!%p140_p9)  ;;  %v275_v13 = vld [vmem:[%s841_s2 + $0x18] sm:$0xff] (!%p140_p9)  ;;  %v276_v15 = vld [vmem:[%s841_s2 + $0x20] sm:$0xff] (!%p140_p9)  ;;  %v655_v55 = vmov (!%p140_p9), -1.0   ;;  %s440_s8 = sshll.u32 (!%p140_p9), %s698_s16, 7 }
  0x10   : > { %513 = vmatpush3.bf16.msra.mxu0 (!%p140_p9), %v512_v4  ;;  %v521_v14 = vpack.c.bf16 (!%p140_p9), %v275_v13, %v274_v12  ;;  %v277_v16 = vld [vmem:[%s841_s2 + $0x28] sm:$0xff] (!%p140_p9)  ;;  %v278_v18 = vld [vmem:[%s841_s2 + $0x30] sm:$0xff] (!%p140_p9)  ;;  %v279_v19 = vld [vmem:[%s841_s2 + $0x38] sm:$0xff] (!%p140_p9)  ;;  %s796_s19 = scalar_lea.hbm (!%p140_p9), %s842_s3, %s440_s8 }
  0x11   : > { %514 = vmatprep.subr.bf16.mxu0 (!%p140_p9), %v652_v3  ;;  %519 = vmatpush3.bf16.msra.mxu1 (!%p140_p9), %v518_v11  ;;  %v524_v17 = vpack.c.bf16 (!%p140_p9), %v277_v16, %v276_v15  ;;  %v527_v20 = vpack.c.bf16 (!%p140_p9), %v279_v19, %v278_v18  ;;  %v280_v21 = vld [vmem:[%s841_s2 + $0x40] sm:$0xff] (!%p140_p9)  ;;  %v281_v22 = vld [vmem:[%s841_s2 + $0x48] sm:$0xff] (!%p140_p9)  ;;  %v282_v24 = vld [vmem:[%s841_s2 + $0x50] sm:$0xff] (!%p140_p9) }
  0x12   : > { %520 = vmatprep.subr.bf16.mxu1 (!%p140_p9), %v652_v3  ;;  %v530_v23 = vpack.c.bf16 (!%p140_p9), %v281_v22, %v280_v21  ;;  %v283_v25 = vld [vmem:[%s841_s2 + $0x58] sm:$0xff] (!%p140_p9)  ;;  %v284_v27 = vld [vmem:[%s841_s2 + $0x60] sm:$0xff] (!%p140_p9)  ;;  %v285_v28 = vld [vmem:[%s841_s2 + $0x68] sm:$0xff] (!%p140_p9) }
  0x13   : > { %v533_v26 = vpack.c.bf16 (!%p140_p9), %v283_v25, %v282_v24  ;;  %v536_v29 = vpack.c.bf16 (!%p140_p9), %v285_v28, %v284_v27  ;;  %v286_v30 = vld [vmem:[%s841_s2 + $0x70] sm:$0xff] (!%p140_p9)  ;;  %v287_v31 = vld [vmem:[%s841_s2 + $0x78] sm:$0xff] (!%p140_p9) }
  0x14   : > { %516 = vmatpush3.bf16.msra.mxu0 (!%p140_p9), %v515_v7  ;;  %v539_v32 = vpack.c.bf16 (!%p140_p9), %v287_v31, %v286_v30 }
  0x15   : > { %s163_s5 = scalar_select %p162_p10, %s698_s16, 1  ;;  %522 = vmatpush3.bf16.msra.mxu1 %v521_v14 }
  0x16   : > { %523 = vmatprep.subr.bf16.mxu1 %v652_v3  ;;  %s656_s16 = smov [#allocation2]  }
  0x17   : > { %s437_s6 = sshll.u32 %s163_s5, 3  ;;  %s592_s25 = sshll.u32 %s656_s16, 4  ;;  %s593_s25 = int_to_ptr.vmem [resolvable:$false] %s592_s25 }
  0x18   : > { %s165_s9 = scalar_lea.vmem %s839_s0, %s437_s6  ;;  %s159_s6 = sand.u32 1, %s642_s13  }
  0x19   : > { %v166_v8 = vld [vmem:[%s165_s9] sm:$0xff]  ;;  %525 = vmatpush3.bf16.msra.mxu1 %v524_v17  ;;  %s436_s7 = sshll.u32 %s159_s6, 3  ;;  %s360_s20 = scalar_lea.sflag [#allocation3], %s159_s6 }
  0x1a   : > { %474 = vmatmul.mubr.msk.f32.vlgmr.msra.gmra.mrb[0].mxu0 %vm171_vm1, %v166_v8  ;;  %526 = vmatprep.subr.bf16.mxu1 %v652_v3  ;;  %s161_s9 = scalar_lea.vmem [#allocation2], %s436_s7  ;;  %s594_s26 = scalar_lea.vmem %s593_s25, 256 }
  0x1b   : > { %s373_s10 = sshll.u32 %s161_s9, 4  ;;  %s798_s10 = int_to_ptr.vmem [resolvable:$true] %s373_s10 }
  0x1c   : > { %s588_s24 = scalar_lea.vmem %s798_s10, 128  ;;  %p595_p0 = scmp.lt.s32.totalorder %s798_s10, %s593_s25 }
  0x1d   : > { %528 = vmatpush3.bf16.msra.mxu1 %v527_v20  ;;  %p589_p11 = scmp.ne.s32.totalorder %s798_s10, %s588_s24  ;;  %p596_p1 = scmp.lt.s32.totalorder %s594_s26, %s588_s24 }
  0x1e   : > { %529 = vmatprep.subr.bf16.mxu1 %v652_v3 }
  0x1f   : > { %p590_p12 = pnand %p589_p11, %p715_p5  ;;  %p597_p2 = por %p596_p1, %p595_p0 }
  0x21   : > { %531 = vmatpush3.bf16.msra.mxu1 %v530_v23  ;;  %p591_p13 = pneg %p590_p12 }
  0x22   : > { %532 = vmatprep.subr.bf16.mxu1 %v652_v3 }
  0x23   : > { %p598_p3 = pnand %p597_p2, %p591_p13 }
  0x25   : > { %534 = vmatpush3.bf16.msra.mxu1 %v533_v26 }
  0x26   : > { %535 = vmatprep.subr.bf16.mxu1 %v652_v3 }
  0x29   : > { %537 = vmatpush3.bf16.msra.mxu1 %v536_v29 }
  0x2a   : > { %538 = vmatprep.subr.bf16.mxu1 %v652_v3 }
  0x2d   : > { %540 = vmatpush3.bf16.msra.mxu1 %v539_v32 }
  0xed   : > { %v241_v33 = vpop.f32.mrb[0].mxu0 }
  0xee   : > { %v246_v34 = vmul.f32 0.70710677, %v241_v33  ;;  %v475_v35 = vpop.f32.mrb[1].mxu0  ;;  %v245_v58 = vmul.f32 0.5, %v241_v33 }
  0xf0   : > { %v249_v36 = vand.u32 2147483647, %v246_v34  ;;  %vm247_vm2 = vcmp.ge.f32.partialorder %v246_v34, 0.0 }
  0xf1   : > { %v248_v56 = vsel %vm247_vm2, 1.0, %v655_v55 }
  0xf2   : > { %v250_v37 = vmul.f32 0.3275911, %v249_v36  ;;  %v263_v39 = vsub.f32 0.0, %v249_v36 }
  0xf4   : > { %v251_v38 = vadd.f32 1.0, %v250_v37  ;;  %v264_v41 = vmul.f32 %v263_v39, %v249_v36 }
  0xf6   : > { %584 = vrcp.f32 %v251_v38  ;;  %v265_v44 = vmul.f32 1.442695, %v264_v41 }
  0xf8   : > { %586 = vpow2.f32 %v265_v44 }
 0x100   : > { %v585_v40 = vpop.eup %584 }
 0x101   : > { %v254_v42 = vmul.f32 1.0614054, %v585_v40 }
 0x102   : > { %v587_v52 = vpop.eup %586 }
 0x103   : > { %v255_v43 = vadd.f32 -1.4531521, %v254_v42 }
 0x105   : > { %v256_v45 = vmul.f32 %v585_v40, %v255_v43 }
 0x107   : > { %v257_v46 = vadd.f32 1.4214138, %v256_v45 }
 0x109   : > { %v258_v47 = vmul.f32 %v585_v40, %v257_v46 }
 0x10b   : > { %v259_v48 = vadd.f32 -0.28449672, %v258_v47 }
 0x10d   : > { %v260_v49 = vmul.f32 %v585_v40, %v259_v48 }
 0x10f   : > { %v261_v50 = vadd.f32 0.2548296, %v260_v49 }
 0x111   : > { %v262_v51 = vmul.f32 %v585_v40, %v261_v50 }
 0x113   : > { %v267_v53 = vmul.f32 %v587_v52, %v262_v51 }
 0x115   : > { %v268_v54 = vsub.f32 1.0, %v267_v53 }
 0x117   : > { %v269_v57 = vmul.f32 %v268_v54, %v248_v56 }
 0x119   : > { %v270_v59 = vadd.f32 1.0, %v269_v57 }
 0x11b   : > { %v271_v60 = vmul.f32 %v270_v59, %v245_v58 }
 0x11d   : > { %509 = vmatmul.mubr.f32.vlgmr.msra.gmra.mrb[0].mxu1 %v271_v60 }
 0x1f0   : > { %v354_v61 = vpop.f32.mrb[0].mxu1 }
 0x1f1   : > { %358 = vst.msk [vmem:[%s161_s9] sm:$0xff] %vm171_vm1, %v354_v61  ;;  %v510_v62 = vpop.f32.mrb[1].mxu1 }
 0x1f2   : > { %601 = shalt.err (!%p598_p3)
}
 0x1f3   : > { %s602_s27 = scalar_lea.hbm %s796_s19, 128  ;;  %s606_s30 = scalar_lea.hbm %s842_s3, 256 }
 0x1f4   : > { %p603_p4 = scmp.ne.s32.totalorder %s796_s19, %s602_s27  ;;  %p607_p9 = scmp.lt.u32.totalorder %s796_s19, %s842_s3 }
 0x1f5   : > { %p608_p10 = scmp.lt.u32.totalorder %s606_s30, %s602_s27  ;;  %p610_p12 = scmp.lt.u32.totalorder %s602_s27, %s796_s19 }
 0x1f6   : > { %p604_p7 = pnand %p603_p4, %p715_p5 }
 0x1f7   : > { %p609_p11 = por %p608_p10, %p607_p9 }
 0x1f8   : > { %p605_p8 = pneg %p604_p7 }
 0x1f9   : > { %p611_p13 = por %p610_p12, %p609_p11 }
 0x1fb   : > { %p612_p0 = pnand %p611_p13, %p605_p8 }
 0x1fd   : > { %615 = shalt.err (!%p612_p0)
}
 0x1fe   : > { %541 = dma.vmem_to_hbm [thread:$0]  (%p715_p5), %s798_s10, 128, %s796_s19, %s360_s20  }
 0x1ff PF: > { %p547_p1 = scmp.ge.s32.totalorder %s650_s15, 2  ;;  %s385_s6 = sand.u32 1, %s638_s12  }
 0x200   : > { %s386_s7 = scalar_lea.sflag [#allocation3], %s385_s6 }
 0x201   : > { %p544_p2 = pnand %p547_p1, %p719_p6 }
 0x203   : > { %633 = dma.done.wait (!%p544_p2), %s386_s7, 128  }
 0x204   : > { %635 = vsyncadd (!%p544_p2), %s386_s7, 4294967168  ;;  %p13_p3 = scmp.ge.s32.totalorder %s702_s18, 4   ;;  %s845_s12 = smov %s642_s13 }
 0x205   : > { %s846_s13 = smov %s646_s14  ;;  %s847_s14 = smov %s713_s21 }
 0x206   : > { %s848_s15 = smov %s702_s18  ;;  %15 = sbr.rel (!%p13_p3) target bundleno = 3 (0x3), region = 67 }
 0x20d   :  { %391 = vsyncpa [#allocation3], 1 }
 0x20e   :  { %393 = vsyncpa [#allocation3 + $0x1], 1 }

</bundles_post_ra>
